<compile_context>
chip_gen: v5e
topology: v5e:2x2
jax: 0.10.0
libtpu: 0.0.40
codegen_flags: <defaults>
</compile_context>

<pallas_src>
from functools import partial

import jax
import jax.numpy as jnp
from jax.experimental import pallas as pl
from jax.experimental.pallas import tpu as pltpu

_LANE = 128
_VMEM_BUDGET = 24 << 20   # keep footprint well under v7x 64 MiB / v5e scoped limits
_VMEM_LIMIT = 32 << 20    # scoped-VMEM limit handed to Mosaic (raises v5e's 16 MiB)
_MAX_TB = 1024            # cap on the batch tile
_MIN_SPLIT_ROWS = 256     # force >=2 grid steps above this batch size (v7x megacore)


def _round_up(n, m):
    return ((n + m - 1) // m) * m


def perceptron_kernel(x_ref, w1_ref, b1_ref, w2_ref, b2_ref, o_ref):
    # Layer 1 on the MXU, f32 accumulation; bias add in f32 on the VPU.
    h = jnp.dot(x_ref[...], w1_ref[...], preferred_element_type=jnp.float32)
    h = h + b1_ref[...]                       # (1, H_pad) broadcasts over rows
    # sigmoid(x) == 0.5*tanh(0.5*x)+0.5 : one EUP op + a VPU FMA.
    h = 0.5 * jnp.tanh(0.5 * h) + 0.5
    # Layer 2; only the matmul operand is cast (bf16 MXU fast path).
    y = jnp.dot(h.astype(w2_ref.dtype), w2_ref[...],
                preferred_element_type=jnp.float32)
    o_ref[...] = (y + b2_ref[...]).astype(o_ref.dtype)
    # TODO(synk): for very large HID, chunk the hidden dim in-kernel (partial
    # pre-activation -> sigmoid -> accumulate layer-2 into an f32 scratch) to
    # bound the live TB x H_pad intermediate instead of materializing all of h.


@partial(jax.jit, static_argnames=("use_bf16", "max_batch_tile"))
def perceptron(x, w1, b1, w2, b2, *, use_bf16=True, max_batch_tile=_MAX_TB):
    B, IN = x.shape
    HID = w1.shape[1]
    OUT = w2.shape[1]

    mat_dtype = jnp.bfloat16 if use_bf16 else jnp.float32
    mat_bytes = 2 if use_bf16 else 4
    sub = 16 if use_bf16 else 8            # bf16 packs 16 rows per vreg

    K_pad = _round_up(IN, _LANE)
    H_pad = _round_up(HID, _LANE)

    # ---- batch tile from an explicit VMEM budget ---------------------------
    # resident: w1, w2, b1, b2.  per-row: x (double-buffered), out (f32,
    # double-buffered), live h (f32 + matmul-dtype copy).
    fixed = (K_pad * H_pad + H_pad * OUT) * mat_bytes + (H_pad + OUT) * 4
    per_row = 2 * K_pad * mat_bytes + 2 * OUT * 4 + H_pad * (4 + mat_bytes)
    tb = max(sub, ((_VMEM_BUDGET - fixed) // per_row) // sub * sub)
    tb = min(tb, _round_up(max_batch_tile, sub))

    B_pad = _round_up(B, sub)
    if B_pad <= tb:
        if B_pad >= _MIN_SPLIT_ROWS:
            # >= 2 grid steps so the parallel batch axis shards across v7x's
            # two TensorCores (no effect on single-TC v5e/v6e).
            tb = _round_up(pl.cdiv(B_pad, 2), sub)
        else:
            tb = B_pad                      # toy sizes: single grid step
    B_pad = _round_up(B_pad, tb)
    grid = (B_pad // tb,)

    # ---- single pad/cast per operand (fused under jit) ---------------------
    x_pad = jnp.pad(x.astype(mat_dtype), ((0, B_pad - B), (0, K_pad - IN)))
    w1_pad = jnp.pad(w1.astype(mat_dtype), ((0, K_pad - IN), (0, H_pad - HID)))
    w2_pad = jnp.pad(w2.astype(mat_dtype), ((0, H_pad - HID), (0, 0)))
    b1_pad = jnp.pad(b1.astype(jnp.float32), (0, H_pad - HID)).reshape(1, H_pad)
    b2_pad = b2.astype(jnp.float32).reshape(1, OUT)

    out = pl.pallas_call(
        perceptron_kernel,
        out_shape=jax.ShapeDtypeStruct((B_pad, OUT), jnp.float32),
        grid=grid,
        in_specs=[
            pl.BlockSpec((tb, K_pad), lambda i: (i, 0)),       # batch-tiled x
            pl.BlockSpec((K_pad, H_pad), lambda i: (0, 0)),    # resident w1
            pl.BlockSpec((1, H_pad), lambda i: (0, 0)),        # resident b1 (f32)
            pl.BlockSpec((H_pad, OUT), lambda i: (0, 0)),      # resident w2
            pl.BlockSpec((1, OUT), lambda i: (0, 0)),          # resident b2 (f32)
        ],
        out_specs=pl.BlockSpec((tb, OUT), lambda i: (i, 0)),   # unpadded lanes
        compiler_params=pltpu.CompilerParams(
            dimension_semantics=("parallel",),
            vmem_limit_bytes=_VMEM_LIMIT,
        ),
    )(x_pad, w1_pad, b1_pad, w2_pad, b2_pad)

    # Padded batch rows hold garbage (sigmoid(b1) @ w2 + b2); slice them off.
    return out[:B]


def perceptron_ref(x, w1, b1, w2, b2):
    h = jax.nn.sigmoid(x @ w1 + b1)
    return h @ w2 + b2


def perceptron_ref_bf16(x, w1, b1, w2, b2):
    # Emulates the kernel's bf16 fast path: bf16 matmul operands, f32
    # accumulation, f32 bias adds.
    bf, f32 = jnp.bfloat16, jnp.float32
    h = jnp.dot(x.astype(bf), w1.astype(bf), preferred_element_type=f32) + b1
    h = jax.nn.sigmoid(h)
    return jnp.dot(h.astype(bf), w2.astype(bf), preferred_element_type=f32) + b2


if __name__ == "__main__":
    # Small shapes implied by the module: batch=8, in=32, hidden=64, out=16
    B, IN, HID, OUT = 8, 32, 64, 16

    key = jax.random.PRNGKey(0)
    kx, kw1, kb1, kw2, kb2 = jax.random.split(key, 5)

    x = jax.random.normal(kx, (B, IN), dtype=jnp.float32)
    w1 = jax.random.normal(kw1, (IN, HID), dtype=jnp.float32)
    b1 = jax.random.normal(kb1, (HID,), dtype=jnp.float32)
    w2 = jax.random.normal(kw2, (HID, OUT), dtype=jnp.float32)
    b2 = jax.random.normal(kb2, (OUT,), dtype=jnp.float32)

    ref = perceptron_ref(x, w1, b1, w2, b2)

    # Strict check: f32 matmul operands.
    out_f32 = perceptron(x, w1, b1, w2, b2, use_bf16=False)
    jax.block_until_ready(out_f32)
    assert out_f32.shape == (B, OUT)
    assert jnp.allclose(out_f32, ref, atol=1e-3, rtol=1e-3), "f32 path mismatch"

    # MXU fast path: bf16 operands, f32 accumulation + f32 bias adds.
    out_bf16 = perceptron(x, w1, b1, w2, b2, use_bf16=True)
    jax.block_until_ready(out_bf16)
    assert out_bf16.shape == (B, OUT)
    ref_bf = perceptron_ref_bf16(x, w1, b1, w2, b2)
    assert jnp.allclose(out_bf16, ref_bf, atol=1e-2, rtol=1e-2), "bf16 path mismatch"

    print("KERNEL_OK")
</pallas_src>

<mosaic_0001>
module attributes {stable_mosaic.version = 11 : i64} {
  func.func @perceptron_kernel(%arg0: i32, %arg1: memref<8x128xf32, #tpu.memory_space<vmem>>, %arg2: memref<128x128xf32, #tpu.memory_space<vmem>>, %arg3: memref<1x128xf32, #tpu.memory_space<vmem>>, %arg4: memref<128x16xf32, #tpu.memory_space<vmem>>, %arg5: memref<1x16xf32, #tpu.memory_space<vmem>>, %arg6: memref<8x16xf32, #tpu.memory_space<vmem>>) attributes {dimension_semantics = [#tpu.dimension_semantics<parallel>], iteration_bounds = array<i64: 1>, scalar_prefetch = 0 : i64, scratch_operands = 0 : i64, tpu.core_type = #tpu.core_type<tc>, window_params = [{transform_indices = @transform_0, window_bounds = array<i64: 8, 128>}, {pipeline_mode = #tpu.pipeline_mode<synchronous>, transform_indices = @transform_1, window_bounds = array<i64: 128, 128>}, {pipeline_mode = #tpu.pipeline_mode<synchronous>, transform_indices = @transform_2, window_bounds = array<i64: 1, 128>}, {pipeline_mode = #tpu.pipeline_mode<synchronous>, transform_indices = @transform_3, window_bounds = array<i64: 128, 16>}, {pipeline_mode = #tpu.pipeline_mode<synchronous>, transform_indices = @transform_4, window_bounds = array<i64: 1, 16>}, {transform_indices = @transform_5, window_bounds = array<i64: 8, 16>}]} {
    %c0 = arith.constant 0 : index
    %c0_0 = arith.constant 0 : index
    %0 = vector.load %arg1[%c0, %c0_0] : memref<8x128xf32, #tpu.memory_space<vmem>>, vector<8x128xf32>
    %c0_1 = arith.constant 0 : index
    %c0_2 = arith.constant 0 : index
    %1 = vector.load %arg2[%c0_1, %c0_2] : memref<128x128xf32, #tpu.memory_space<vmem>>, vector<128x128xf32>
    %cst = arith.constant dense<0.000000e+00> : vector<8x128xf32>
    %2 = tpu.matmul %0, %1, %cst {dimension_numbers = #tpu.dot_dimension_numbers<[1], [0], [0], [1], [0, 0, 1, 1], [], []>} : vector<8x128xf32>, vector<128x128xf32>, vector<8x128xf32> -> vector<8x128xf32>
    %c0_3 = arith.constant 0 : index
    %c0_4 = arith.constant 0 : index
    %3 = vector.load %arg3[%c0_3, %c0_4] : memref<1x128xf32, #tpu.memory_space<vmem>>, vector<1x128xf32>
    %4 = vector.broadcast %3 : vector<1x128xf32> to vector<8x128xf32>
    %5 = arith.addf %2, %4 : vector<8x128xf32>
    %cst_5 = arith.constant 5.000000e-01 : f32
    %6 = vector.broadcast %cst_5 : f32 to vector<8x128xf32>
    %7 = arith.mulf %6, %5 : vector<8x128xf32>
    %8 = math.tanh %7 : vector<8x128xf32>
    %cst_6 = arith.constant 5.000000e-01 : f32
    %9 = vector.broadcast %cst_6 : f32 to vector<8x128xf32>
    %10 = arith.mulf %9, %8 : vector<8x128xf32>
    %cst_7 = arith.constant 5.000000e-01 : f32
    %11 = vector.broadcast %cst_7 : f32 to vector<8x128xf32>
    %12 = arith.addf %10, %11 : vector<8x128xf32>
    %c0_8 = arith.constant 0 : index
    %c0_9 = arith.constant 0 : index
    %13 = vector.load %arg4[%c0_8, %c0_9] : memref<128x16xf32, #tpu.memory_space<vmem>>, vector<128x16xf32>
    %cst_10 = arith.constant dense<0.000000e+00> : vector<8x16xf32>
    %14 = tpu.matmul %12, %13, %cst_10 {dimension_numbers = #tpu.dot_dimension_numbers<[1], [0], [0], [1], [0, 0, 1, 1], [], []>} : vector<8x128xf32>, vector<128x16xf32>, vector<8x16xf32> -> vector<8x16xf32>
    %c0_11 = arith.constant 0 : index
    %c0_12 = arith.constant 0 : index
    %15 = vector.load %arg5[%c0_11, %c0_12] : memref<1x16xf32, #tpu.memory_space<vmem>>, vector<1x16xf32>
    %16 = vector.broadcast %15 : vector<1x16xf32> to vector<8x16xf32>
    %17 = arith.addf %14, %16 : vector<8x16xf32>
    %c0_13 = arith.constant 0 : index
    %c0_14 = arith.constant 0 : index
    %18 = vector.load %arg6[%c0_13, %c0_14] : memref<8x16xf32, #tpu.memory_space<vmem>>, vector<8x16xf32>
    tpu.vector_store %arg6[%c0_13, %c0_14], %17 {strides = array<i32>} : memref<8x16xf32, #tpu.memory_space<vmem>>, vector<8x16xf32>,
    return
  }
  func.func @transform_0(%arg0: i32) -> (i32, i32) {
    %c0_i32 = arith.constant 0 : i32
    %c0_i32_0 = arith.constant 0 : i32
    return %arg0, %c0_i32 : i32, i32
  }
  func.func @transform_1(%arg0: i32) -> (i32, i32) {
    %c0_i32 = arith.constant 0 : i32
    %c0_i32_0 = arith.constant 0 : i32
    %c0_i32_1 = arith.constant 0 : i32
    return %c0_i32, %c0_i32_0 : i32, i32
  }
  func.func @transform_2(%arg0: i32) -> (i32, i32) {
    %c0_i32 = arith.constant 0 : i32
    %c0_i32_0 = arith.constant 0 : i32
    %c0_i32_1 = arith.constant 0 : i32
    return %c0_i32, %c0_i32_0 : i32, i32
  }
  func.func @transform_3(%arg0: i32) -> (i32, i32) {
    %c0_i32 = arith.constant 0 : i32
    %c0_i32_0 = arith.constant 0 : i32
    %c0_i32_1 = arith.constant 0 : i32
    return %c0_i32, %c0_i32_0 : i32, i32
  }
  func.func @transform_4(%arg0: i32) -> (i32, i32) {
    %c0_i32 = arith.constant 0 : i32
    %c0_i32_0 = arith.constant 0 : i32
    %c0_i32_1 = arith.constant 0 : i32
    return %c0_i32, %c0_i32_0 : i32, i32
  }
  func.func @transform_5(%arg0: i32) -> (i32, i32) {
    %c0_i32 = arith.constant 0 : i32
    %c0_i32_0 = arith.constant 0 : i32
    return %arg0, %c0_i32 : i32, i32
  }
}

</mosaic_0001>

<bundles_post_ra>
// kernel: perceptron.1
= control target key start
LH: loop header
LB: loop body
LE: loop exit
PB: predicated region body
PF: predicated region fallthrough
CT: control target
= control target key end

     0   :  { %s294_s0 = inlined_call_operand.vmem [shape: f32[8,128], index: 0, kind: input, shape index: {}]   ;;  %s295_s1 = inlined_call_operand.vmem [shape: f32[128,128], index: 1, kind: input, shape index: {}]   ;;  %s296_s2 = inlined_call_operand.vmem [shape: f32[1,128], index: 2, kind: input, shape index: {}]   ;;  %s297_s3 = inlined_call_operand.vmem [shape: f32[128,16], index: 3, kind: input, shape index: {}]   ;;  %s298_s4 = inlined_call_operand.vmem [shape: f32[1,16], index: 4, kind: input, shape index: {}]   ;;  %s299_s5 = inlined_call_operand.hbm [shape: f32[8,16], index: 5, kind: output, shape index: {}]  }
   0x1   :  { %v37_v0 = vld [vmem:[%s295_s1 + $0x78] sm:$0xff]  ;;  %v36_v1 = vld [vmem:[%s295_s1 + $0x70] sm:$0xff]  ;;  %v35_v2 = vld [vmem:[%s295_s1 + $0x68] sm:$0xff] }
   0x2   :  { %42 = vmatpush.msra.mxu0 %v37_v0  ;;  %v34_v3 = vld [vmem:[%s295_s1 + $0x60] sm:$0xff]  ;;  %v81_v4 = vld [vmem:[%s297_s3 + $0x78] sm:$0xff]  ;;  %v80_v6 = vld [vmem:[%s297_s3 + $0x70] sm:$0xff] }
   0x3   :  { %v33_v5 = vld [vmem:[%s295_s1 + $0x58] sm:$0xff]  ;;  %86 = vmatpush.msra.mxu1 %v81_v4  ;;  %v79_v7 = vld [vmem:[%s297_s3 + $0x68] sm:$0xff]  ;;  %v32_v8 = vld [vmem:[%s295_s1 + $0x50] sm:$0xff] }
   0x4   :  { %43 = vmatpush.msra.mxu0 %v36_v1  ;;  %v78_v9 = vld [vmem:[%s297_s3 + $0x60] sm:$0xff] }
   0x5   :  { %87 = vmatpush.msra.mxu1 %v80_v6 }
   0x6   :  { %44 = vmatpush.msra.mxu0 %v35_v2 }
   0x8   :  { %45 = vmatpush.msra.mxu0 %v34_v3 }
   0xa   :  { %46 = vmatpush.msra.mxu0 %v33_v5 }
   0xb   :  { %10 = vsyncpa [#allocation3], 0  ;;  %v31_v10 = vld [vmem:[%s295_s1 + $0x48] sm:$0xff]  ;;  %88 = vmatpush.msra.mxu1 %v79_v7  ;;  %v77_v11 = vld [vmem:[%s297_s3 + $0x58] sm:$0xff]  ;;  %s155_s11 = smov [#allocation2]   ;;  %s115_s14 = sshll.u32 %s299_s5, 4  ;;  %s116_s14 = int_to_ptr.hbm [resolvable:$true] %s115_s14 }
   0xc   :  { %47 = vmatpush.msra.mxu0 %v32_v8  ;;  %v30_v12 = vld [vmem:[%s295_s1 + $0x40] sm:$0xff]  ;;  %v76_v13 = vld [vmem:[%s297_s3 + $0x50] sm:$0xff]  ;;  %v29_v14 = vld [vmem:[%s295_s1 + $0x38] sm:$0xff]  ;;  %vm106_vm0 = vcmask 130048  }
   0xd   :  { %89 = vmatpush.msra.mxu1 %v78_v9  ;;  %v75_v15 = vld [vmem:[%s297_s3 + $0x48] sm:$0xff]  ;;  %v28_v16 = vld [vmem:[%s295_s1 + $0x30] sm:$0xff]  ;;  %v74_v17 = vld [vmem:[%s297_s3 + $0x40] sm:$0xff] }
   0xe   :  { %48 = vmatpush.msra.mxu0 %v31_v10  ;;  %v27_v18 = vld [vmem:[%s295_s1 + $0x28] sm:$0xff]  ;;  %v26_v19 = vld [vmem:[%s295_s1 + $0x20] sm:$0xff]  ;;  %v25_v20 = vld [vmem:[%s295_s1 + $0x18] sm:$0xff] }
   0xf   :  { %90 = vmatpush.msra.mxu1 %v77_v11  ;;  %v24_v21 = vld [vmem:[%s295_s1 + $0x10] sm:$0xff]  ;;  %v23_v22 = vld [vmem:[%s295_s1 + $0x8] sm:$0xff]  ;;  %v22_v23 = vld [vmem:[%s295_s1] sm:$0xff] }
  0x10   :  { %49 = vmatpush.msra.mxu0 %v30_v12  ;;  %v21_v24 = vld [vmem:[%s294_s0] sm:$0xff]  ;;  %v73_v25 = vld [vmem:[%s297_s3 + $0x38] sm:$0xff]  ;;  %v72_v26 = vld [vmem:[%s297_s3 + $0x30] sm:$0xff] }
  0x11   :  { %91 = vmatpush.msra.mxu1 %v76_v13  ;;  %v71_v27 = vld [vmem:[%s297_s3 + $0x28] sm:$0xff]  ;;  %v70_v28 = vld [vmem:[%s297_s3 + $0x20] sm:$0xff]  ;;  %v69_v29 = vld [vmem:[%s297_s3 + $0x18] sm:$0xff] }
  0x12   :  { %50 = vmatpush.msra.mxu0 %v29_v14  ;;  %v68_v30 = vld [vmem:[%s297_s3 + $0x10] sm:$0xff]  ;;  %v67_v31 = vld [vmem:[%s297_s3 + $0x8] sm:$0xff]  ;;  %v66_v32 = vld [vmem:[%s297_s3] sm:$0xff]  ;;  %s113_s3 = sshll.u32 %s155_s11, 4  ;;  %s114_s3 = int_to_ptr.vmem [resolvable:$true] %s113_s3 }
  0x13   :  { %92 = vmatpush.msra.mxu1 %v75_v15  ;;  %v125_v33 = vld [vmem:[%s296_s2] ss:$0 sm:$0xff] }
  0x14   :  { %51 = vmatpush.msra.mxu0 %v28_v16  ;;  %v126_v40 = vld [vmem:[%s298_s4] ss:$0 sm:$0xff] }
  0x15   :  { %93 = vmatpush.msra.mxu1 %v74_v17 }
  0x16   :  { %52 = vmatpush.msra.mxu0 %v27_v18 }
  0x17   :  { %94 = vmatpush.msra.mxu1 %v73_v25 }
  0x18   :  { %53 = vmatpush.msra.mxu0 %v26_v19 }
  0x19   :  { %95 = vmatpush.msra.mxu1 %v72_v26 }
  0x1a   :  { %54 = vmatpush.msra.mxu0 %v25_v20 }
  0x1b   :  { %96 = vmatpush.msra.mxu1 %v71_v27 }
  0x1c   :  { %55 = vmatpush.msra.mxu0 %v24_v21 }
  0x1d   :  { %97 = vmatpush.msra.mxu1 %v70_v28 }
  0x1e   :  { %56 = vmatpush.msra.mxu0 %v23_v22 }
  0x1f   :  { %98 = vmatpush.msra.mxu1 %v69_v29 }
  0x20   :  { %57 = vmatpush.msra.mxu0 %v22_v23 }
  0x21   :  { %58 = vmatmul.f32.vlgmr.msra.gmra.mxu0 %v21_v24  ;;  %99 = vmatpush.msra.mxu1 %v68_v30 }
  0x23   :  { %100 = vmatpush.msra.mxu1 %v67_v31 }
  0x25   :  { %101 = vmatpush.msra.mxu1 %v66_v32 }
  0x9e   :  { %v59_v34 = vpop.f32.mrf.mxu0 }
  0x9f   :  { %v60_v35 = vadd.f32 %v125_v33, %v59_v34 }
  0xa1   :  { %v62_v36 = vmul.f32 0.5, %v60_v35 }
  0xa3   :  { %127 = vtanh.f32 %v62_v36 }
  0xa9   :  { %v128_v37 = vpop.eup %127 }
  0xaa   :  { %v64_v38 = vmul.f32 0.5, %v128_v37 }
  0xac   :  { %v65_v39 = vadd.f32 0.5, %v64_v38 }
  0xae   :  { %102 = vmatmul.f32.vlgmr.msra.gmra.mxu1 %v65_v39 }
 0x12b   :  { %v103_v41 = vpop.f32.mrf.mxu1 }
 0x12c   :  { %v104_v42 = vadd.f32 %v126_v40, %v103_v41 }
 0x12e   :  { %107 = vst.msk [vmem:[#allocation2] sm:$0xff] %vm106_vm0, %v104_v42 }
 0x12f   :  { %118 = dma.vmem_to_hbm [thread:$0]  %s114_s3, 128, %s116_s14, [#allocation3]  }
 0x130   :  { %153 = dma.done.wait [#allocation3], 128  }
 0x131   :  { %154 = vsyncadd [#allocation3], 4294967168 }
 0x132   :  { %123 = vsyncpa [#allocation3], 1 }

</bundles_post_ra>
